<compile_context>
chip_gen: v5e
topology: v5e:2x2
jax: 0.10.0
libtpu: 0.0.40
codegen_flags: <defaults>
</compile_context>

<pallas_src>
import functools
import math

import jax
import jax.numpy as jnp
from jax.experimental import pallas as pl
from jax.experimental.pallas import tpu as pltpu

NEG_INF = -1e9


def _round_up(x, m):
    return (x + m - 1) // m * m


def _cparams(sem, block_bytes):
    # Explicit scoped-VMEM limit sized from the block footprint (double-buffered)
    # with headroom, clamped to a range that is safe on v5e/v6e/v7x.
    limit = int(min(max(2 * block_bytes + (4 << 20), 16 << 20), 48 << 20))
    return pltpu.CompilerParams(dimension_semantics=sem, vmem_limit_bytes=limit)


def _roll_time(x, shift, T):
    """np.roll along axis 0 with a static, normalized (non-negative) shift."""
    s = shift % T
    if s == 0:
        return x
    return pltpu.roll(x, shift=s, axis=0)


# ----------------------------- 1x1 conv kernels ------------------------------

def _matmul_bias_kernel(x_ref, w_ref, b_ref, o_ref):
    x = x_ref[...].astype(jnp.bfloat16)
    y = jnp.dot(x, w_ref[...], preferred_element_type=jnp.float32) + b_ref[...]
    o_ref[...] = y.astype(o_ref.dtype)


def _matmul_bias_mask_kernel(x_ref, m_ref, w_ref, b_ref, o_ref):
    x = x_ref[...].astype(jnp.bfloat16)
    y = jnp.dot(x, w_ref[...], preferred_element_type=jnp.float32) + b_ref[...]
    o_ref[...] = (y * m_ref[...]).astype(o_ref.dtype)


def conv1x1(x, w, b, mask_col=None, block_m=512):
    """x: (B, T, Cin) f32; w: (Cin, Cout) bf16; b: (1, Cout) f32; mask: (B, T, 1)."""
    B, T, Cin = x.shape
    Cout = w.shape[1]
    M = B * T
    tm = min(block_m, _round_up(M, 8))
    Mp = _round_up(M, tm)
    xm = x.reshape(M, Cin)
    if Mp != M:
        xm = jnp.pad(xm, ((0, Mp - M), (0, 0)))
    b2 = b.reshape(1, Cout).astype(jnp.float32)
    grid = (Mp // tm,)
    block_bytes = 4 * (tm * Cin + tm * Cout + tm + Cout) + 2 * Cin * Cout

    if mask_col is None:
        out = pl.pallas_call(
            _matmul_bias_kernel,
            out_shape=jax.ShapeDtypeStruct((Mp, Cout), jnp.float32),
            grid=grid,
            in_specs=[
                pl.BlockSpec((tm, Cin), lambda i: (i, 0)),
                pl.BlockSpec((Cin, Cout), lambda i: (0, 0)),
                pl.BlockSpec((1, Cout), lambda i: (0, 0)),
            ],
            out_specs=pl.BlockSpec((tm, Cout), lambda i: (i, 0)),
            compiler_params=_cparams(("parallel",), block_bytes),
        )(xm, w, b2)
    else:
        mm = mask_col.reshape(M, 1).astype(jnp.float32)
        if Mp != M:
            mm = jnp.pad(mm, ((0, Mp - M), (0, 0)))
        out = pl.pallas_call(
            _matmul_bias_mask_kernel,
            out_shape=jax.ShapeDtypeStruct((Mp, Cout), jnp.float32),
            grid=grid,
            in_specs=[
                pl.BlockSpec((tm, Cin), lambda i: (i, 0)),
                pl.BlockSpec((tm, 1), lambda i: (i, 0)),
                pl.BlockSpec((Cin, Cout), lambda i: (0, 0)),
                pl.BlockSpec((1, Cout), lambda i: (0, 0)),
            ],
            out_specs=pl.BlockSpec((tm, Cout), lambda i: (i, 0)),
            compiler_params=_cparams(("parallel",), block_bytes),
        )(xm, mm, w, b2)
    return out[:M].reshape(B, T, Cout)


# --------------------------- fused EncoderLayer kernel ------------------------

def _encoder_layer_kernel(x_ref, m_ref, cw_ref, cb_ref,
                          wq_ref, bq_ref, wk_ref, bk_ref, wv_ref, bv_ref,
                          wo_ref, bo_ref, c2w_ref, c2b_ref, o_ref,
                          *, dilation, alpha, T, dk_true):
    x = x_ref[0]                                       # (T, Cp) f32
    mcol = m_ref[0]                                    # (T, 1) f32
    x16 = x.astype(jnp.bfloat16)
    d = dilation

    t_idx = jax.lax.broadcasted_iota(jnp.int32, (T, 1), 0)

    # --- dilated conv1d (k=3, padding=dilation): XLU rolls + boundary zeroing ---
    # out[t] = W0 x[t-d] + W1 x[t] + W2 x[t+d] + b   (zero padding outside [0, T))
    x_prev = jnp.where(t_idx >= d, _roll_time(x, d, T), 0.0)
    x_next = jnp.where(t_idx < T - d, _roll_time(x, -d, T), 0.0)
    y = (jnp.dot(x_prev.astype(jnp.bfloat16), cw_ref[0], preferred_element_type=jnp.float32)
         + jnp.dot(x16, cw_ref[1], preferred_element_type=jnp.float32)
         + jnp.dot(x_next.astype(jnp.bfloat16), cw_ref[2], preferred_element_type=jnp.float32)
         + cb_ref[...])
    y = jnp.maximum(y, 0.0)                            # ReLU activation
    residual = y

    # --- InstanceNorm1d (affine=False, eps=1e-5): per-channel stats over time ---
    mean = jnp.mean(y, axis=0, keepdims=True)
    var = jnp.mean(jnp.square(y - mean), axis=0, keepdims=True)
    yn16 = ((y - mean) * jax.lax.rsqrt(var + 1e-5)).astype(jnp.bfloat16)

    # --- single-head banded local attention, window = 2*(dilation//2)+1 ---
    q = jnp.dot(yn16, wq_ref[...], preferred_element_type=jnp.float32) + bq_ref[...]
    k = jnp.dot(yn16, wk_ref[...], preferred_element_type=jnp.float32) + bk_ref[...]
    v = jnp.dot(yn16, wv_ref[...], preferred_element_type=jnp.float32) + bv_ref[...]
    scale = 1.0 / math.sqrt(dk_true)

    # Stash the key-mask bias in a guaranteed-zero (padded) lane of k so it rides
    # along with the time roll; q is exactly zero in that lane so scores are unchanged.
    lane = jax.lax.broadcasted_iota(jnp.int32, k.shape, 1)
    key_bias = jnp.where(mcol > 0.0, 0.0, NEG_INF)     # (T, 1)
    k = jnp.where(lane == dk_true, key_bias, k)

    half = d // 2
    m_run = jnp.full((T, 1), -jnp.inf, jnp.float32)
    l_run = jnp.zeros((T, 1), jnp.float32)
    acc = jnp.zeros_like(v)
    # TODO(synk): for very large dilations (window >> ~64) switch to a KV-tile
    #             banded flash loop instead of this static per-offset unroll.
    for o in range(-half, half + 1):
        if o == 0:
            k_o, v_o = k, v
            bound_bias = 0.0
        else:
            k_o = _roll_time(k, -o, T)
            v_o = _roll_time(v, -o, T)
            in_bounds = jnp.logical_and(t_idx + o >= 0, t_idx + o < T)
            bound_bias = jnp.where(in_bounds, 0.0, NEG_INF)
        kb_o = jnp.sum(jnp.where(lane == dk_true, k_o, 0.0), axis=1, keepdims=True)
        s = jnp.sum(q * k_o, axis=1, keepdims=True) * scale + kb_o + bound_bias
        m_new = jnp.maximum(m_run, s)
        corr = jnp.exp(m_run - m_new)
        p = jnp.exp(s - m_new)
        l_run = corr * l_run + p
        acc = corr * acc + p * v_o
        m_run = m_new
    attn = acc * pl.reciprocal(l_run, approx=True)      # (T, Dkp)
    attn_out = (jnp.dot(attn.astype(jnp.bfloat16), wo_ref[...],
                        preferred_element_type=jnp.float32) + bo_ref[...]) * mcol

    out = alpha * attn_out + residual
    # conv2 (1x1); ffn dropout is eval-mode identity.
    out2 = jnp.dot(out.astype(jnp.bfloat16), c2w_ref[...],
                   preferred_element_type=jnp.float32) + c2b_ref[...]
    o_ref[0] = ((x + out2) * mcol).astype(o_ref.dtype)


def encoder_layer(x, mask_col, lp, dilation, alpha, dk_true):
    B, T, Cp = x.shape
    Dkp = lp["wq"].shape[1]
    kernel = functools.partial(_encoder_layer_kernel, dilation=int(dilation),
                               alpha=float(alpha), T=T, dk_true=int(dk_true))
    per_b = lambda i: (i, 0, 0)
    full2 = lambda i: (0, 0)
    full3 = lambda i: (0, 0, 0)
    w_bytes = 2 * (4 * Cp * Cp + 3 * Cp * Dkp + Dkp * Cp)
    block_bytes = w_bytes + 4 * (2 * T * Cp + T) + 8 * T * max(Cp, Dkp)
    return pl.pallas_call(
        kernel,
        out_shape=jax.ShapeDtypeStruct((B, T, Cp), jnp.float32),
        grid=(B,),
        in_specs=[
            pl.BlockSpec((1, T, Cp), per_b),          # x
            pl.BlockSpec((1, T, 1), per_b),           # mask (column form)
            pl.BlockSpec((3, Cp, Cp), full3),         # conv1 taps, (Cin, Cout) bf16
            pl.BlockSpec((1, Cp), full2),             # conv1 bias
            pl.BlockSpec((Cp, Dkp), full2),           # Wq
            pl.BlockSpec((1, Dkp), full2),            # bq
            pl.BlockSpec((Cp, Dkp), full2),           # Wk
            pl.BlockSpec((1, Dkp), full2),            # bk
            pl.BlockSpec((Cp, Dkp), full2),           # Wv
            pl.BlockSpec((1, Dkp), full2),            # bv
            pl.BlockSpec((Dkp, Cp), full2),           # Wo
            pl.BlockSpec((1, Cp), full2),             # bo
            pl.BlockSpec((Cp, Cp), full2),            # conv2 weight
            pl.BlockSpec((1, Cp), full2),             # conv2 bias
        ],
        out_specs=pl.BlockSpec((1, T, Cp), per_b),
        compiler_params=_cparams(("parallel",), block_bytes),
    )(x, mask_col,
      lp["conv1_w"], lp["conv1_b"], lp["wq"], lp["bq"], lp["wk"], lp["bk"],
      lp["wv"], lp["bv"], lp["wo"], lp["bo"], lp["conv2_w"], lp["conv2_b"])


# ------------------------------- Encoder glue ---------------------------------

def init_params(key, input_dim, num_classes, num_layers, d_model):
    """Parameters in PyTorch-like layouts (Conv1d weight: (Cout, Cin[, K]))."""
    dk = d_model // 2
    keys = iter(jax.random.split(key, 4 + num_layers * 12))

    def w(shape, scale=0.1):
        return scale * jax.random.normal(next(keys), shape, jnp.float32)

    params = {
        "in_w": w((d_model, input_dim)), "in_b": w((d_model,)),
        "out_w": w((num_classes, d_model)), "out_b": w((num_classes,)),
        "layers": [],
    }
    for _ in range(num_layers):
        params["layers"].append(dict(
            conv1_w=w((d_model, d_model, 3)), conv1_b=w((d_model,)),
            wq=w((dk, d_model)), bq=w((dk,)),
            wk=w((dk, d_model)), bk=w((dk,)),
            wv=w((dk, d_model)), bv=w((dk,)),
            wo=w((d_model, dk)), bo=w((d_model,)),
            conv2_w=w((d_model, d_model)), conv2_b=w((d_model,)),
        ))
    return params


def prepare_params(params, input_dim, num_classes, d_model):
    """Pre-transpose weights to (Cin, Cout), zero-pad channel dims to 128-lane
    multiples (exact — padded channels stay zero), cast matmul weights to bf16."""
    dk = d_model // 2
    Cp = _round_up(d_model, 128)
    Dkp = _round_up(dk + 1, 128)          # +1 guarantees a spare lane for the mask bias
    NCp = _round_up(num_classes, 128)

    def mat(wt, cin, cout, cin_p, cout_p):
        m = jnp.zeros((cin_p, cout_p), jnp.float32).at[:cin, :cout].set(wt.T)
        return m.astype(jnp.bfloat16)

    def vec(b, cout, cout_p):
        return jnp.zeros((1, cout_p), jnp.float32).at[0, :cout].set(b)

    prepped = {
        "in_w": mat(params["in_w"], input_dim, d_model, input_dim, Cp),
        "in_b": vec(params["in_b"], d_model, Cp),
        "out_w": mat(params["out_w"], d_model, num_classes, Cp, NCp),
        "out_b": vec(params["out_b"], num_classes, NCp),
        "layers": [],
    }
    for lp in params["layers"]:
        taps = jnp.stack(
            [mat(lp["conv1_w"][:, :, kk], d_model, d_model, Cp, Cp) for kk in range(3)],
            axis=0)                                   # taps for x[t-d], x[t], x[t+d]
        prepped["layers"].append(dict(
            conv1_w=taps, conv1_b=vec(lp["conv1_b"], d_model, Cp),
            wq=mat(lp["wq"], d_model, dk, Cp, Dkp), bq=vec(lp["bq"], dk, Dkp),
            wk=mat(lp["wk"], d_model, dk, Cp, Dkp), bk=vec(lp["bk"], dk, Dkp),
            wv=mat(lp["wv"], d_model, dk, Cp, Dkp), bv=vec(lp["bv"], dk, Dkp),
            wo=mat(lp["wo"], dk, d_model, Dkp, Cp), bo=vec(lp["bo"], d_model, Cp),
            conv2_w=mat(lp["conv2_w"], d_model, d_model, Cp, Cp),
            conv2_b=vec(lp["conv2_b"], d_model, Cp),
        ))
    return prepped


def encoder_forward(params, x, input_mask, alpha, input_dim, num_classes, d_model):
    """x: (B, T, input_dim), input_mask: (B, T). Dropouts are eval-mode identity."""
    B, T, _ = x.shape
    dk = d_model // 2
    prepped = prepare_params(params, input_dim, num_classes, d_model)
    mask_col = input_mask.reshape(B, T, 1).astype(jnp.float32)

    feature = conv1x1(x, prepped["in_w"], prepped["in_b"])            # (B, T, Cp)
    for i, lp in enumerate(prepped["layers"]):
        feature = encoder_layer(feature, mask_col, lp, dilation=2 ** i,
                                alpha=alpha, dk_true=dk)
    out = conv1x1(feature, prepped["out_w"], prepped["out_b"], mask_col=mask_col)
    return out[:, :, :num_classes], feature[:, :, :d_model]


if __name__ == "__main__":
    B, T = 2, 16
    input_dim, num_classes, num_layers, d_model = 8, 6, 3, 32
    alpha = 1.0

    key = jax.random.PRNGKey(0)
    kx, kp = jax.random.split(key)
    x = jax.random.normal(kx, (B, T, input_dim), jnp.float32)          # (B, T, Cin)
    input_mask = jnp.concatenate(
        [jnp.ones((B, 12), jnp.float32), jnp.zeros((B, 4), jnp.float32)], axis=1)

    params = init_params(kp, input_dim, num_classes, num_layers, d_model)
    out, feature = encoder_forward(params, x, input_mask, alpha,
                                   input_dim, num_classes, d_model)
    jax.block_until_ready((out, feature))

    assert out.shape == (B, T, num_classes)
    assert feature.shape == (B, T, d_model)
    assert bool(jnp.all(jnp.isfinite(out))) and bool(jnp.all(jnp.isfinite(feature)))
    print("KERNEL_OK")
</pallas_src>

<mosaic_0001>
module attributes {stable_mosaic.version = 11 : i64} {
  func.func @_matmul_bias_kernel(%arg0: i32, %arg1: memref<32x8xf32, #tpu.memory_space<vmem>>, %arg2: memref<8x128xbf16, #tpu.memory_space<vmem>>, %arg3: memref<1x128xf32, #tpu.memory_space<vmem>>, %arg4: memref<32x128xf32, #tpu.memory_space<vmem>>) attributes {dimension_semantics = [#tpu.dimension_semantics<parallel>], iteration_bounds = array<i64: 1>, scalar_prefetch = 0 : i64, scratch_operands = 0 : i64, tpu.core_type = #tpu.core_type<tc>, window_params = [{transform_indices = @transform_0, window_bounds = array<i64: 32, 8>}, {pipeline_mode = #tpu.pipeline_mode<synchronous>, transform_indices = @transform_1, window_bounds = array<i64: 8, 128>}, {pipeline_mode = #tpu.pipeline_mode<synchronous>, transform_indices = @transform_2, window_bounds = array<i64: 1, 128>}, {transform_indices = @transform_3, window_bounds = array<i64: 32, 128>}]} {
    %c0 = arith.constant 0 : index
    %c0_0 = arith.constant 0 : index
    %0 = vector.load %arg1[%c0, %c0_0] : memref<32x8xf32, #tpu.memory_space<vmem>>, vector<32x8xf32>
    %1 = arith.truncf %0 : vector<32x8xf32> to vector<32x8xbf16>
    %c0_1 = arith.constant 0 : index
    %c0_2 = arith.constant 0 : index
    %2 = vector.load %arg2[%c0_1, %c0_2] : memref<8x128xbf16, #tpu.memory_space<vmem>>, vector<8x128xbf16>
    %cst = arith.constant dense<0.000000e+00> : vector<32x128xf32>
    %3 = tpu.matmul %1, %2, %cst {dimension_numbers = #tpu.dot_dimension_numbers<[1], [0], [0], [1], [0, 0, 1, 1], [], []>} : vector<32x8xbf16>, vector<8x128xbf16>, vector<32x128xf32> -> vector<32x128xf32>
    %c0_3 = arith.constant 0 : index
    %c0_4 = arith.constant 0 : index
    %4 = vector.load %arg3[%c0_3, %c0_4] : memref<1x128xf32, #tpu.memory_space<vmem>>, vector<1x128xf32>
    %5 = vector.broadcast %4 : vector<1x128xf32> to vector<32x128xf32>
    %6 = arith.addf %3, %5 : vector<32x128xf32>
    %c0_5 = arith.constant 0 : index
    %c0_6 = arith.constant 0 : index
    %7 = vector.load %arg4[%c0_5, %c0_6] : memref<32x128xf32, #tpu.memory_space<vmem>>, vector<32x128xf32>
    tpu.vector_store %arg4[%c0_5, %c0_6], %6 {strides = array<i32>} : memref<32x128xf32, #tpu.memory_space<vmem>>, vector<32x128xf32>,
    return
  }
  func.func @transform_0(%arg0: i32) -> (i32, i32) {
    %c0_i32 = arith.constant 0 : i32
    %c0_i32_0 = arith.constant 0 : i32
    return %arg0, %c0_i32 : i32, i32
  }
  func.func @transform_1(%arg0: i32) -> (i32, i32) {
    %c0_i32 = arith.constant 0 : i32
    %c0_i32_0 = arith.constant 0 : i32
    %c0_i32_1 = arith.constant 0 : i32
    return %c0_i32, %c0_i32_0 : i32, i32
  }
  func.func @transform_2(%arg0: i32) -> (i32, i32) {
    %c0_i32 = arith.constant 0 : i32
    %c0_i32_0 = arith.constant 0 : i32
    %c0_i32_1 = arith.constant 0 : i32
    return %c0_i32, %c0_i32_0 : i32, i32
  }
  func.func @transform_3(%arg0: i32) -> (i32, i32) {
    %c0_i32 = arith.constant 0 : i32
    %c0_i32_0 = arith.constant 0 : i32
    return %arg0, %c0_i32 : i32, i32
  }
}

</mosaic_0001>

<bundles_post_ra>
// kernel: tpu_custom_call.1
= control target key start
LH: loop header
LB: loop body
LE: loop exit
PB: predicated region body
PF: predicated region fallthrough
CT: control target
= control target key end

     0   :  { %vm34_vm0 = vcmask 1043456   ;;  %vm27_vm1 = vcmask 64512   ;;  %s156_s0 = inlined_call_operand.vmem [shape: f32[32,8], index: 0, kind: input, shape index: {}]   ;;  %s157_s1 = inlined_call_operand.vmem [shape: bf16[8,128], index: 1, kind: input, shape index: {}]   ;;  %s158_s2 = inlined_call_operand.vmem [shape: f32[1,128], index: 2, kind: input, shape index: {}]   ;;  %s159_s3 = inlined_call_operand.hbm [shape: f32[32,128], index: 3, kind: output, shape index: {}]  }
   0x1   :  { %v22_v0 = vld [vmem:[%s157_s1] sm:$0xf]  ;;  %v17_v2 = vld [vmem:[%s156_s0 + $0x8] sm:$0xff]  ;;  %v18_v5 = vld [vmem:[%s156_s0 + $0x10] sm:$0xff] }
   0x2   :  { %v16_v1 = vld [vmem:[%s156_s0] sm:$0xff]  ;;  %v36_v3 = vsel %vm34_vm0, %v22_v0, 0  ;;  %v19_v6 = vld [vmem:[%s156_s0 + $0x18] sm:$0xff] }
   0x3   :  { %v20_v4 = vpack.c.bf16 %v17_v2, %v16_v1  ;;  %45 = vmatpush.bf16.msra.mxu0 %v36_v3  ;;  %81 = vmatpush.bf16.msra.mxu1 %v36_v3  ;;  %v21_v7 = vpack.c.bf16 %v19_v6, %v18_v5 }
   0x4   :  { %8 = vsyncpa [#allocation3], 0  ;;  %v85_v8 = vld [vmem:[%s158_s2] ss:$0 sm:$0xff]  ;;  %s112_s23 = smov [#allocation2]   ;;  %s67_s26 = sshll.u32 %s159_s3, 4  ;;  %s68_s26 = int_to_ptr.hbm [resolvable:$true] %s67_s26 }
   0x5   :  { %s65_s24 = sshll.u32 %s112_s23, 4  ;;  %s113_s2 = smov 128   ;;  %s66_s24 = int_to_ptr.vmem [resolvable:$true] %s65_s24 }
   0x6   :  { %79 = vmatmul.msk.bf16.vlgmr.msra.gmra.mxu0 %vm27_vm1, %v20_v4  ;;  %80 = vmatmul.msk.bf16.vlgmr.msra.gmra.mxu1 %vm27_vm1, %v21_v7  ;;  %s114_s27 = smov 8  }
  0x83   :  { %v47_v9 = vpop.f32.mrf.mxu0  ;;  %v52_v10 = vpop.f32.mrf.mxu1 }
  0x84   :  { %v48_v11 = vadd.f32 %v85_v8, %v47_v9  ;;  %v53_v12 = vadd.f32 %v85_v8, %v52_v10 }
  0x86   :  { %57 = vst [vmem:[#allocation2] sm:$0xff] %v48_v11 }
  0x87   :  { %59 = vst [vmem:[#allocation2 + $0x10] sm:$0xff] %v53_v12 }
  0x8b   :  { %v49_v13 = vpop.f32.mrf.mxu0  ;;  %v54_v14 = vpop.f32.mrf.mxu1 }
  0x8c   :  { %v50_v15 = vadd.f32 %v85_v8, %v49_v13  ;;  %v55_v16 = vadd.f32 %v85_v8, %v54_v14 }
  0x8e   :  { %58 = vst [vmem:[#allocation2 + $0x8] sm:$0xff] %v50_v15 }
  0x8f   :  { %60 = vst [vmem:[#allocation2 + $0x18] sm:$0xff] %v55_v16 }
  0x90   :  { %73 = dma.vmem_to_hbm [thread:$0]  %s66_s24, 512, %s68_s26, [#allocation3], %s113_s2, %s113_s2, %s114_s27  }
  0x91   :  { %110 = dma.done.wait [#allocation3], 512  }
  0x92   :  { %111 = vsyncadd [#allocation3], 4294966784 }
  0x93   :  { %78 = vsyncpa [#allocation3], 1 }

</bundles_post_ra>
